<compile_context>
chip_gen: v5e
topology: v5e:2x2
jax: 0.10.0
libtpu: 0.0.40
codegen_flags: <defaults>
</compile_context>

<pallas_src>
from functools import partial

import jax
import jax.numpy as jnp
from jax import lax
from jax.experimental import pallas as pl
from jax.experimental.pallas import tpu as pltpu

LANE = 128


def _round_up(x, m):
    return (x + m - 1) // m * m


def _conv_bn_kernel(*refs, has_residual):
    """Fused (im2col-matmul + folded BN [+ residual add]) kernel.

    refs (has_residual=False): p_ref, w_ref, s_ref, b_ref, o_ref, acc_ref
    refs (has_residual=True):  p_ref, w_ref, s_ref, b_ref, r_ref, o_ref, acc_ref

    p_ref : (tile_m, tile_k) bf16 im2col patches
    w_ref : (tile_k, tile_n) bf16 weights (contraction = kh*kw*cin, padded)
    s_ref : (1, tile_n) f32 folded BN scale
    b_ref : (1, tile_n) f32 folded BN bias
    r_ref : (tile_m, tile_n) f32 residual (shortcut) to add
    o_ref : (tile_m, tile_n) f32 output
    acc_ref: (tile_m, tile_n) f32 VMEM accumulator
    """
    if has_residual:
        p_ref, w_ref, s_ref, b_ref, r_ref, o_ref, acc_ref = refs
    else:
        p_ref, w_ref, s_ref, b_ref, o_ref, acc_ref = refs
        r_ref = None
    ki = pl.program_id(2)

    @pl.when(ki == 0)
    def _():
        acc_ref[...] = jnp.zeros_like(acc_ref)

    acc_ref[...] += jnp.dot(p_ref[...], w_ref[...],
                            preferred_element_type=jnp.float32)

    @pl.when(ki == pl.num_programs(2) - 1)
    def _():
        y = acc_ref[...] * s_ref[...] + b_ref[...]
        if has_residual:
            y = y + r_ref[...]
        o_ref[...] = y.astype(o_ref.dtype)


def _fused_conv_bn(x_pc, w_oihw, scale, bias, stride, residual_pc=None):
    """One ConvKX + folded BN (+ residual) as a single Pallas matmul call.

    x_pc        : (N, H, W, Cp_in) f32 NHWC, channels zero-padded to 128-multiple
    w_oihw      : (Cout, Cin, K, K) true (unpadded) conv weights
    scale, bias : (Cout,) folded BN parameters
    residual_pc : optional (N, OH, OW, Cp_out) f32 added after BN
    returns     : (N, OH, OW, Cp_out) f32, padded channels are exactly zero
    """
    N, H, W, Cp_in = x_pc.shape
    Cout, Cin, K, _ = w_oihw.shape
    pad = (K - 1) // 2
    OH = (H + 2 * pad - K) // stride + 1
    OW = (W + 2 * pad - K) // stride + 1
    Cp_out = _round_up(Cout, LANE)

    # ---- wrapper-side layout plumbing (strided im2col; cheap XLA glue) ----
    xp = jnp.pad(x_pc, ((0, 0), (pad, pad), (pad, pad), (0, 0)))
    taps = []
    for kh in range(K):
        for kw in range(K):
            taps.append(lax.slice(
                xp,
                (0, kh, kw, 0),
                (N, kh + stride * (OH - 1) + 1,
                 kw + stride * (OW - 1) + 1, Cp_in),
                (1, stride, stride, 1)))
    patches = jnp.concatenate(taps, axis=-1)            # (N, OH, OW, K*K*Cp_in)
    Kc = K * K * Cp_in
    M = N * OH * OW

    tile_m = LANE
    Mp = _round_up(M, tile_m)
    patches = patches.reshape(M, Kc)
    if Mp != M:
        patches = jnp.pad(patches, ((0, Mp - M), (0, 0)))
    patches = patches.astype(jnp.bfloat16)

    # OIHW -> (kh, kw, cin, cout), zero-pad cin/cout, flatten -> (Kc, Cp_out)
    w = jnp.transpose(w_oihw, (2, 3, 1, 0)).astype(jnp.float32)
    w = jnp.pad(w, ((0, 0), (0, 0), (0, Cp_in - Cin), (0, Cp_out - Cout)))
    w = w.reshape(Kc, Cp_out).astype(jnp.bfloat16)

    scale_p = jnp.pad(scale.astype(jnp.float32),
                      (0, Cp_out - Cout)).reshape(1, Cp_out)
    bias_p = jnp.pad(bias.astype(jnp.float32),
                     (0, Cp_out - Cout)).reshape(1, Cp_out)

    tile_n = 256 if Cp_out % 256 == 0 else LANE
    tile_k = next(t for t in (512, 256, 128) if Kc % t == 0)
    grid = (Mp // tile_m, Cp_out // tile_n, Kc // tile_k)

    in_specs = [
        pl.BlockSpec((tile_m, tile_k), lambda mi, ni, ki: (mi, ki)),
        pl.BlockSpec((tile_k, tile_n), lambda mi, ni, ki: (ki, ni)),
        pl.BlockSpec((1, tile_n), lambda mi, ni, ki: (0, ni)),
        pl.BlockSpec((1, tile_n), lambda mi, ni, ki: (0, ni)),
    ]
    inputs = [patches, w, scale_p, bias_p]

    has_residual = residual_pc is not None
    if has_residual:
        r = residual_pc.reshape(M, Cp_out).astype(jnp.float32)
        if Mp != M:
            r = jnp.pad(r, ((0, Mp - M), (0, 0)))
        in_specs.append(
            pl.BlockSpec((tile_m, tile_n), lambda mi, ni, ki: (mi, ni)))
        inputs.append(r)

    out = pl.pallas_call(
        partial(_conv_bn_kernel, has_residual=has_residual),
        out_shape=jax.ShapeDtypeStruct((Mp, Cp_out), jnp.float32),
        grid_spec=pltpu.PrefetchScalarGridSpec(
            num_scalar_prefetch=0,
            grid=grid,
            in_specs=in_specs,
            out_specs=pl.BlockSpec((tile_m, tile_n),
                                   lambda mi, ni, ki: (mi, ni)),
            scratch_shapes=[pltpu.VMEM((tile_m, tile_n), jnp.float32)],
        ),
        compiler_params=pltpu.CompilerParams(
            dimension_semantics=("parallel", "parallel", "arbitrary"),
            vmem_limit_bytes=32 * 1024 * 1024),
    )(*inputs)

    return out[:M].reshape(N, OH, OW, Cp_out)


def _fold_bn(gamma, beta, mean, var, eps=1e-5):
    scale = gamma / jnp.sqrt(var + eps)
    return scale, beta - mean * scale


def resblock_forward(x_nchw, params, stride):
    """ResBlock forward: conv3x3/s -> BN -> conv3x3/1 -> BN, plus 1x1/s+BN shortcut."""
    w1, bn1, w2, bn2, wp, bnp = params
    N, Cin, H, W = x_nchw.shape
    Cout = w2.shape[0]
    Cp_in = _round_up(Cin, LANE)

    # NCHW -> NHWC once; keep the whole block NHWC / channel-padded.
    x = jnp.transpose(x_nchw, (0, 2, 3, 1)).astype(jnp.float32)
    x = jnp.pad(x, ((0, 0), (0, 0), (0, 0), (0, Cp_in - Cin)))

    s1, b1 = _fold_bn(*bn1)
    s2, b2 = _fold_bn(*bn2)
    sp, bp = _fold_bn(*bnp)

    t = _fused_conv_bn(x, w1, s1, b1, stride)                    # conv1 + bn1
    shortcut = _fused_conv_bn(x, wp, sp, bp, stride)             # 1x1 proj + bn
    y = _fused_conv_bn(t, w2, s2, b2, 1, residual_pc=shortcut)   # conv2 + bn2 + add

    y = y[..., :Cout]
    return jnp.transpose(y, (0, 3, 1, 2))                        # NHWC -> NCHW


if __name__ == "__main__":
    # ResBlock(4, 2, ConvKX(4,8,3,2) BN(8) ConvKX(8,8,3,1) BN(8)) with 1x1 proj.
    N, Cin, H, W = 2, 4, 16, 16
    Cmid, Cout, K, stride = 8, 8, 3, 2

    key = jax.random.PRNGKey(0)
    ks = jax.random.split(key, 8)

    def conv_w(k, co, ci, kk):
        fan_in = ci * kk * kk
        bound = 1.0 / (fan_in ** 0.5)
        return jax.random.uniform(k, (co, ci, kk, kk), jnp.float32, -bound, bound)

    def bn_params(k, c):
        k1, k2, k3, k4 = jax.random.split(k, 4)
        return (jax.random.uniform(k1, (c,), jnp.float32, 0.5, 1.5),    # gamma
                jax.random.uniform(k2, (c,), jnp.float32, -0.5, 0.5),   # beta
                jax.random.uniform(k3, (c,), jnp.float32, -0.5, 0.5),   # running_mean
                jax.random.uniform(k4, (c,), jnp.float32, 0.5, 1.5))    # running_var

    x = jax.random.normal(ks[0], (N, Cin, H, W), jnp.float32)
    w1 = conv_w(ks[1], Cmid, Cin, K)
    bn1 = bn_params(ks[2], Cmid)
    w2 = conv_w(ks[3], Cout, Cmid, K)
    bn2 = bn_params(ks[4], Cout)
    wp = conv_w(ks[5], Cout, Cin, 1)
    bnp = bn_params(ks[6], Cout)
    params = (w1, bn1, w2, bn2, wp, bnp)

    out = resblock_forward(x, params, stride)
    out = jax.block_until_ready(out)

    # ------------ reference (pure XLA, mirrors the PyTorch forward) ------------
    def ref_conv(xr, w, s, pad_):
        return lax.conv_general_dilated(
            xr, w, window_strides=(s, s), padding=[(pad_, pad_), (pad_, pad_)],
            dimension_numbers=("NCHW", "OIHW", "NCHW"),
            precision=lax.Precision.HIGHEST)

    def ref_bn(xr, bn):
        sc, bi = _fold_bn(*bn)
        return xr * sc[None, :, None, None] + bi[None, :, None, None]

    def r16(a):  # mirror the kernel's bf16 rounding of MXU operands
        return a.astype(jnp.bfloat16).astype(jnp.float32)

    t_ref = ref_bn(ref_conv(r16(x), r16(w1), stride, 1), bn1)
    main_ref = ref_bn(ref_conv(r16(t_ref), r16(w2), 1, 1), bn2)
    proj_ref = ref_bn(ref_conv(r16(x), r16(wp), stride, 0), bnp)
    ref = main_ref + proj_ref

    assert out.shape == ref.shape == (N, Cout, H // stride, W // stride), \
        (out.shape, ref.shape)
    err = float(jnp.max(jnp.abs(out - ref)))
    assert err < 1e-2, err
    print("KERNEL_OK")
</pallas_src>

<mosaic_0001>
module attributes {stable_mosaic.version = 11 : i64} {
  func.func @_conv_bn_kernel(%arg0: i32, %arg1: i32, %arg2: i32, %arg3: memref<128x128xbf16, #tpu.memory_space<vmem>>, %arg4: memref<128x128xbf16, #tpu.memory_space<vmem>>, %arg5: memref<1x128xf32, #tpu.memory_space<vmem>>, %arg6: memref<1x128xf32, #tpu.memory_space<vmem>>, %arg7: memref<128x128xf32, #tpu.memory_space<vmem>>, %arg8: memref<128x128xf32, #tpu.memory_space<vmem>>) attributes {dimension_semantics = [#tpu.dimension_semantics<parallel>, #tpu.dimension_semantics<parallel>, #tpu.dimension_semantics<arbitrary>], iteration_bounds = array<i64: 1, 1, 9>, scalar_prefetch = 0 : i64, scratch_operands = 1 : i64, tpu.core_type = #tpu.core_type<tc>, window_params = [{transform_indices = @transform_0, window_bounds = array<i64: 128, 128>}, {transform_indices = @transform_1, window_bounds = array<i64: 128, 128>}, {transform_indices = @transform_2, window_bounds = array<i64: 1, 128>}, {transform_indices = @transform_3, window_bounds = array<i64: 1, 128>}, {transform_indices = @transform_4, window_bounds = array<i64: 128, 128>}]} {
    %c0_i32 = arith.constant 0 : i32
    %0 = arith.cmpi eq, %arg2, %c0_i32 : i32
    %1 = arith.extui %0 : i1 to i32
    %c0_i32_0 = arith.constant 0 : i32
    %2 = arith.cmpi ne, %1, %c0_i32_0 : i32
    scf.if %2 {
      %cst_9 = arith.constant 0.000000e+00 : f32
      %12 = vector.broadcast %cst_9 : f32 to vector<128x128xf32>
      %c0_10 = arith.constant 0 : index
      %c0_11 = arith.constant 0 : index
      %13 = vector.load %arg8[%c0_10, %c0_11] : memref<128x128xf32, #tpu.memory_space<vmem>>, vector<128x128xf32>
      tpu.vector_store %arg8[%c0_10, %c0_11], %12 {strides = array<i32>} : memref<128x128xf32, #tpu.memory_space<vmem>>, vector<128x128xf32>,
    } else {
    }
    %c0 = arith.constant 0 : index
    %c0_1 = arith.constant 0 : index
    %3 = vector.load %arg8[%c0, %c0_1] : memref<128x128xf32, #tpu.memory_space<vmem>>, vector<128x128xf32>
    %c0_2 = arith.constant 0 : index
    %c0_3 = arith.constant 0 : index
    %4 = vector.load %arg3[%c0_2, %c0_3] : memref<128x128xbf16, #tpu.memory_space<vmem>>, vector<128x128xbf16>
    %c0_4 = arith.constant 0 : index
    %c0_5 = arith.constant 0 : index
    %5 = vector.load %arg4[%c0_4, %c0_5] : memref<128x128xbf16, #tpu.memory_space<vmem>>, vector<128x128xbf16>
    %cst = arith.constant dense<0.000000e+00> : vector<128x128xf32>
    %6 = tpu.matmul %4, %5, %cst {dimension_numbers = #tpu.dot_dimension_numbers<[1], [0], [0], [1], [0, 0, 1, 1], [], []>} : vector<128x128xbf16>, vector<128x128xbf16>, vector<128x128xf32> -> vector<128x128xf32>
    %7 = arith.addf %3, %6 : vector<128x128xf32>
    %c0_6 = arith.constant 0 : index
    %c0_7 = arith.constant 0 : index
    %8 = vector.load %arg8[%c0_6, %c0_7] : memref<128x128xf32, #tpu.memory_space<vmem>>, vector<128x128xf32>
    tpu.vector_store %arg8[%c0_6, %c0_7], %7 {strides = array<i32>} : memref<128x128xf32, #tpu.memory_space<vmem>>, vector<128x128xf32>,
    %c8_i32 = arith.constant 8 : i32
    %9 = arith.cmpi eq, %arg2, %c8_i32 : i32
    %10 = arith.extui %9 : i1 to i32
    %c0_i32_8 = arith.constant 0 : i32
    %11 = arith.cmpi ne, %10, %c0_i32_8 : i32
    scf.if %11 {
      %c0_9 = arith.constant 0 : index
      %c0_10 = arith.constant 0 : index
      %12 = vector.load %arg8[%c0_9, %c0_10] : memref<128x128xf32, #tpu.memory_space<vmem>>, vector<128x128xf32>
      %c0_11 = arith.constant 0 : index
      %c0_12 = arith.constant 0 : index
      %13 = vector.load %arg5[%c0_11, %c0_12] : memref<1x128xf32, #tpu.memory_space<vmem>>, vector<1x128xf32>
      %14 = vector.broadcast %13 : vector<1x128xf32> to vector<128x128xf32>
      %15 = arith.mulf %12, %14 : vector<128x128xf32>
      %c0_13 = arith.constant 0 : index
      %c0_14 = arith.constant 0 : index
      %16 = vector.load %arg6[%c0_13, %c0_14] : memref<1x128xf32, #tpu.memory_space<vmem>>, vector<1x128xf32>
      %17 = vector.broadcast %16 : vector<1x128xf32> to vector<128x128xf32>
      %18 = arith.addf %15, %17 : vector<128x128xf32>
      %c0_15 = arith.constant 0 : index
      %c0_16 = arith.constant 0 : index
      %19 = vector.load %arg7[%c0_15, %c0_16] : memref<128x128xf32, #tpu.memory_space<vmem>>, vector<128x128xf32>
      tpu.vector_store %arg7[%c0_15, %c0_16], %18 {strides = array<i32>} : memref<128x128xf32, #tpu.memory_space<vmem>>, vector<128x128xf32>,
    } else {
    }
    return
  }
  func.func @transform_0(%arg0: i32, %arg1: i32, %arg2: i32) -> (i32, i32) {
    %c0_i32 = arith.constant 0 : i32
    return %arg0, %arg2 : i32, i32
  }
  func.func @transform_1(%arg0: i32, %arg1: i32, %arg2: i32) -> (i32, i32) {
    %c0_i32 = arith.constant 0 : i32
    return %arg2, %arg1 : i32, i32
  }
  func.func @transform_2(%arg0: i32, %arg1: i32, %arg2: i32) -> (i32, i32) {
    %c0_i32 = arith.constant 0 : i32
    %c0_i32_0 = arith.constant 0 : i32
    return %c0_i32, %arg1 : i32, i32
  }
  func.func @transform_3(%arg0: i32, %arg1: i32, %arg2: i32) -> (i32, i32) {
    %c0_i32 = arith.constant 0 : i32
    %c0_i32_0 = arith.constant 0 : i32
    return %c0_i32, %arg1 : i32, i32
  }
  func.func @transform_4(%arg0: i32, %arg1: i32, %arg2: i32) -> (i32, i32) {
    %c0_i32 = arith.constant 0 : i32
    return %arg0, %arg1 : i32, i32
  }
}

</mosaic_0001>

<bundles_post_ra>
// kernel: tpu_custom_call.1
= control target key start
LH: loop header
LB: loop body
LE: loop exit
PB: predicated region body
PF: predicated region fallthrough
CT: control target
= control target key end

     0   :  { %9 = vsyncpa [#allocation4], 0  ;;  %s1283_s0 = inlined_call_operand.hbm [shape: bf16[128,1152], index: 0, kind: input, shape index: {}]   ;;  %s1284_s1 = inlined_call_operand.hbm [shape: bf16[1152,128], index: 1, kind: input, shape index: {}]   ;;  %s1285_s2 = inlined_call_operand.vmem [shape: f32[1,128], index: 2, kind: input, shape index: {}]   ;;  %s1286_s3 = inlined_call_operand.vmem [shape: f32[1,128], index: 3, kind: input, shape index: {}]   ;;  %s1287_s4 = inlined_call_operand.hbm [shape: f32[128,128], index: 4, kind: output, shape index: {}]  }
   0x1   :  { %11 = vsyncpa [#allocation4 + $0x1], 0 }
   0x2   :  { %12 = vsyncpa [#allocation7], 0 }
   0x3   :  { %14 = vsyncpa [#allocation7 + $0x1], 0 }
   0x4   :  { %15 = vsyncpa [#allocation5], 0  ;;  %s1144_s15 = smov 0   ;;  %s1146_s16 = smov 0  }
   0x5   :  { %s1148_s17 = smov 0   ;;  %s1150_s18 = smov 0  }
   0x6   :  { %s1152_s19 = smov 0   ;;  %s1154_s20 = smov 0  }
   0x7 LB: > { %s1288_s21 = sadd.s32 4294967295, %s1110_s20   ;;  %s33_s22 = sadd.s32 1, %s1106_s19  ;;  %s1110_s20 = sphi %s1154_s20, %s21_s20   ;;  %s1106_s19 = sphi %s1152_s19, %s1297_s19   ;;  %s1102_s18 = sphi %s1150_s18, %s1296_s18   ;;  %s1098_s17 = sphi %s1148_s17, %s1295_s17   ;;  %s1094_s16 = sphi %s1146_s16, %s1294_s16   ;;  %s1090_s15 = sphi %s1144_s15, %s1293_s15  }
   0x8   : > { %p34_p0 = scmp.ge.s32.totalorder %s33_s22, 9  ;;  %s49_s23 = sadd.s32 1, %s1098_s17 }
   0x9   : > { %p56_p1 = scmp.ne.s32.totalorder %s1098_s17, %s1094_s16  ;;  %p57_p2 = scmp.eq.s32.totalorder %s1110_s20, 0 }
   0xa   : > { %s1299_s22 = smov (%p34_p0, %s33_s22), 0  ;;  %p62_p4 = scmp.ne.s32.totalorder %s1094_s16, %s1090_s15 }
   0xb   : > { %p1180_p3 = por %p57_p2, %p56_p1  ;;  %s45_s25 = ssub.s32 %s1106_s19, %s1299_s22 }
   0xc   : > { %p63_p5 = scmp.eq.s32.totalorder %s1288_s21, 0  ;;  %p47_p6 = scmp.eq.s32.totalorder %s45_s25, 0 }
   0xd   : > { %p904_p8 = scmp.lt.s32.totalorder %s1110_s20, 9  ;;  %s1198_s28 = sand.u32 1, %s1098_s17  }
   0xe   : > { %p1189_p7 = por %p63_p5, %p62_p4  ;;  %s771_s29 = sshll.u32 %s1106_s19, 2 }
   0xf   : > { %s1195_s27 = scalar_select %p47_p6, %s1098_s17, %s49_s23  }
  0x10   : > { %s770_s30 = sshll.u32 %s1198_s28, 6  ;;  %s217_s7 = scalar_lea.hbm %s1283_s0, %s771_s29 }
  0x11   : > { %s218_s8 = sshll.u32 %s217_s7, 4  ;;  %s210_s9 = scalar_lea.vmem [#allocation3], %s770_s30  ;;  %s219_s8 = int_to_ptr.hbm [resolvable:$true] %s218_s8 }
  0x12   : > { %s220_s10 = sshll.u32 %s210_s9, 4  ;;  %p1207_p9 = pnand %p904_p8, %p1180_p3  ;;  %s221_s10 = int_to_ptr.vmem [resolvable:$true] %s220_s10 }
  0x13   : > { %p775_p10 = scmp.ge.s32.totalorder %s1110_s20, 1  ;;  %s207_s12 = scalar_lea.sflag [#allocation4], %s1198_s28 }
  0x14   : > { %s1112_s13 = smov 576   ;;  %s1113_s14 = smov 64  }
  0x15   : > { %s1114_s15 = smov 4   ;;  %p251_p11 = scmp.lt.s32.totalorder %s1110_s20, 10 }
  0x16   : > { %900 = dma.hbm_to_vmem [thread:$0]  (!%p1207_p9), %s219_s8, 1024, %s221_s10, %s207_s12, %s1112_s13, %s1113_s14, %s1114_s15  }
  0x17   : > { %s848_s23 = sshll.u32 %s1106_s19, 6  ;;  %p252_p12 = pnand %p775_p10, %p251_p11 }
  0x18   : > { %s240_s24 = scalar_lea.hbm %s1284_s1, %s848_s23  ;;  %s234_s6 = scalar_lea.vmem [#allocation6], %s770_s30 }
  0x19   : > { %s241_s5 = sshll.u32 %s240_s24, 4  ;;  %s243_s7 = sshll.u32 %s234_s6, 4  ;;  %s242_s5 = int_to_ptr.hbm [resolvable:$true] %s241_s5  ;;  %s244_s7 = int_to_ptr.vmem [resolvable:$true] %s243_s7 }
  0x1a   : > { %s231_s9 = scalar_lea.sflag [#allocation7], %s1198_s28  ;;  %255 = sbr.rel (%p252_p12) target bundleno = 279 (0x117), region = 36 }
  0x1b   : > { %903 = dma.hbm_to_vmem [thread:$0]  (!%p1207_p9), %s242_s5, 1024, %s244_s7, %s231_s9, %s1113_s14, %s1113_s14, %s1114_s15  }
  0x1c   : > { %s257_s21 = sand.u32 (!%p252_p12), 1, %s1094_s16  }
  0x1d   : > { %s776_s8 = sshll.u32 (!%p252_p12), %s257_s21, 6  ;;  %s258_s10 = scalar_lea.sflag (!%p252_p12), [#allocation4], %s257_s21 }
  0x1e   : > { %s1224_s12 = scalar_lea.vmem (!%p252_p12), [#allocation3], %s776_s8 }
  0x1f   : > { %1077 = dma.done.wait (%p1189_p7), %s258_s10, 1024  }
  0x20   : > { %1079 = vsyncadd (%p1189_p7), %s258_s10, 4294966272  ;;  %s268_s30 = scalar_lea.sflag [#allocation7], %s257_s21  ;;  %s1230_s13 = scalar_lea.vmem [#allocation6], %s776_s8 }
  0x21   : > { %1081 = dma.done.wait (%p1189_p7), %s268_s30, 1024  }
  0x22   : > { %1083 = vsyncadd (%p1189_p7), %s268_s30, 4294966272  ;;  %p778_p13 = scmp.ne.s32.totalorder %s1102_s18, 0 }
  0x24   : > { %315 = sbr.rel (%p778_p13) target bundleno = 58 (0x3a), region = 48 }
  0x29   : > { %v1115_v0 = vmov 0.0  }
  0x2a   : > { %316 = vst [vmem:[#allocation2 + $0x30] sm:$0xff] %v1115_v0 }
  0x2b   : > { %317 = vst [vmem:[#allocation2] sm:$0xff] %v1115_v0 }
  0x2c   : > { %318 = vst [vmem:[#allocation2 + $0x58] sm:$0xff] %v1115_v0 }
  0x2d   : > { %319 = vst [vmem:[#allocation2 + $0x18] sm:$0xff] %v1115_v0 }
  0x2e   : > { %320 = vst [vmem:[#allocation2 + $0x50] sm:$0xff] %v1115_v0 }
  0x2f   : > { %321 = vst [vmem:[#allocation2 + $0x68] sm:$0xff] %v1115_v0 }
  0x30   : > { %322 = vst [vmem:[#allocation2 + $0x8] sm:$0xff] %v1115_v0 }
  0x31   : > { %323 = vst [vmem:[#allocation2 + $0x48] sm:$0xff] %v1115_v0 }
  0x32   : > { %324 = vst [vmem:[#allocation2 + $0x40] sm:$0xff] %v1115_v0 }
  0x33   : > { %325 = vst [vmem:[#allocation2 + $0x20] sm:$0xff] %v1115_v0 }
  0x34   : > { %326 = vst [vmem:[#allocation2 + $0x10] sm:$0xff] %v1115_v0 }
  0x35   : > { %327 = vst [vmem:[#allocation2 + $0x38] sm:$0xff] %v1115_v0 }
  0x36   : > { %328 = vst [vmem:[#allocation2 + $0x60] sm:$0xff] %v1115_v0 }
  0x37   : > { %329 = vst [vmem:[#allocation2 + $0x70] sm:$0xff] %v1115_v0 }
  0x38   : > { %330 = vst [vmem:[#allocation2 + $0x78] sm:$0xff] %v1115_v0 }
  0x39   : > { %331 = vst [vmem:[#allocation2 + $0x28] sm:$0xff] %v1115_v0 }
  0x3a PF: > { %v864_v1 = vld [vmem:[%s1230_s13 + $0x38] sm:$0xff]  ;;  %v863_v2 = vld [vmem:[%s1230_s13 + $0x30] sm:$0xff]  ;;  %v862_v3 = vld [vmem:[%s1230_s13 + $0x28] sm:$0xff]  ;;  %p843_p0 = scmp.ne.s32.totalorder %s1102_s18, 8 }
  0x3b   : > { %476 = vmatpush.bf16.msra.mxu0 %v864_v1  ;;  %865 = vmatpush.bf16.msra.mxu1 %v864_v1  ;;  %v861_v4 = vld [vmem:[%s1230_s13 + $0x20] sm:$0xff]  ;;  %v860_v5 = vld [vmem:[%s1230_s13 + $0x18] sm:$0xff]  ;;  %v859_v6 = vld [vmem:[%s1230_s13 + $0x10] sm:$0xff] }
  0x3c   : > { %866 = vmatpush.bf16.msra.mxu2 %v864_v1  ;;  %867 = vmatpush.bf16.msra.mxu3 %v864_v1  ;;  %v858_v7 = vld [vmem:[%s1230_s13 + $0x8] sm:$0xff]  ;;  %v857_v8 = vld [vmem:[%s1230_s13] sm:$0xff]  ;;  %v851_v10 = vld [vmem:[%s1224_s12 + $0x10] sm:$0xff] }
  0x3d   : > { %v849_v9 = vld [vmem:[%s1224_s12] sm:$0xff]  ;;  %v855_v12 = vld [vmem:[%s1224_s12 + $0x30] sm:$0xff]  ;;  %v850_v13 = vld [vmem:[%s1224_s12 + $0x8] sm:$0xff] }
  0x3e   : > { %v853_v11 = vld [vmem:[%s1224_s12 + $0x20] sm:$0xff]  ;;  %v852_v14 = vld [vmem:[%s1224_s12 + $0x18] sm:$0xff]  ;;  %v854_v15 = vld [vmem:[%s1224_s12 + $0x28] sm:$0xff] }
  0x3f   : > { %477 = vmatpush.bf16.msra.mxu0 %v863_v2  ;;  %868 = vmatpush.bf16.msra.mxu1 %v863_v2  ;;  %v856_v16 = vld [vmem:[%s1224_s12 + $0x38] sm:$0xff]  ;;  %v332_v17 = vld [vmem:[#allocation2 + $0x30] sm:$0xff]  ;;  %v340_v23 = vld [vmem:[#allocation2 + $0x40] sm:$0xff] }
  0x40   : > { %869 = vmatpush.bf16.msra.mxu2 %v863_v2  ;;  %870 = vmatpush.bf16.msra.mxu3 %v863_v2  ;;  %v336_v18 = vld [vmem:[#allocation2 + $0x50] sm:$0xff]  ;;  %v344_v24 = vld [vmem:[#allocation2 + $0x60] sm:$0xff]  ;;  %v337_v26 = vld [vmem:[#allocation2 + $0x68] sm:$0xff] }
  0x41   : > { %v333_v25 = vld [vmem:[#allocation2] sm:$0xff]  ;;  %v345_v36 = vld [vmem:[#allocation2 + $0x70] sm:$0xff]  ;;  %v334_v37 = vld [vmem:[#allocation2 + $0x58] sm:$0xff] }
  0x42   : > { %v341_v35 = vld [vmem:[#allocation2 + $0x20] sm:$0xff]  ;;  %v338_v38 = vld [vmem:[#allocation2 + $0x8] sm:$0xff]  ;;  %v342_v47 = vld [vmem:[#allocation2 + $0x10] sm:$0xff] }
  0x43   : > { %478 = vmatpush.bf16.msra.mxu0 %v862_v3  ;;  %871 = vmatpush.bf16.msra.mxu1 %v862_v3  ;;  %v346_v48 = vld [vmem:[#allocation2 + $0x78] sm:$0xff]  ;;  %v339_v50 = vld [vmem:[#allocation2 + $0x48] sm:$0xff] }
  0x44   : > { %872 = vmatpush.bf16.msra.mxu2 %v862_v3  ;;  %873 = vmatpush.bf16.msra.mxu3 %v862_v3  ;;  %v335_v49 = vld [vmem:[#allocation2 + $0x18] sm:$0xff]  ;;  %v347_v60 = vld [vmem:[#allocation2 + $0x28] sm:$0xff] }
  0x45   : > { %v343_v59 = vld [vmem:[#allocation2 + $0x38] sm:$0xff] }
  0x47   : > { %479 = vmatpush.bf16.msra.mxu0 %v861_v4  ;;  %874 = vmatpush.bf16.msra.mxu1 %v861_v4 }
  0x48   : > { %875 = vmatpush.bf16.msra.mxu2 %v861_v4  ;;  %876 = vmatpush.bf16.msra.mxu3 %v861_v4 }
  0x4b   : > { %480 = vmatpush.bf16.msra.mxu0 %v860_v5  ;;  %877 = vmatpush.bf16.msra.mxu1 %v860_v5 }
  0x4c   : > { %878 = vmatpush.bf16.msra.mxu2 %v860_v5  ;;  %879 = vmatpush.bf16.msra.mxu3 %v860_v5 }
  0x4f   : > { %481 = vmatpush.bf16.msra.mxu0 %v859_v6  ;;  %880 = vmatpush.bf16.msra.mxu1 %v859_v6 }
  0x50   : > { %881 = vmatpush.bf16.msra.mxu2 %v859_v6  ;;  %882 = vmatpush.bf16.msra.mxu3 %v859_v6 }
  0x53   : > { %482 = vmatpush.bf16.msra.mxu0 %v858_v7  ;;  %883 = vmatpush.bf16.msra.mxu1 %v858_v7 }
  0x54   : > { %884 = vmatpush.bf16.msra.mxu2 %v858_v7  ;;  %885 = vmatpush.bf16.msra.mxu3 %v858_v7 }
  0x57   : > { %483 = vmatpush.bf16.msra.mxu0 %v857_v8  ;;  %886 = vmatpush.bf16.msra.mxu1 %v857_v8 }
  0x58   : > { %887 = vmatpush.bf16.msra.mxu2 %v857_v8  ;;  %888 = vmatpush.bf16.msra.mxu3 %v857_v8 }
  0x5a   : > { %484 = vmatmul.bf16.vlgmr.msra.gmra.mxu0 %v849_v9  ;;  %494 = vmatmul.bf16.vlgmr.msra.gmra.mxu1 %v851_v10 }
  0x5b   : > { %504 = vmatmul.bf16.vlgmr.msra.gmra.mxu2 %v853_v11  ;;  %514 = vmatmul.bf16.vlgmr.msra.gmra.mxu3 %v855_v12 }
  0x6a   : > { %489 = vmatmul.bf16.gmra.mxu0 %v850_v13  ;;  %499 = vmatmul.bf16.gmra.mxu1 %v852_v14 }
  0x6b   : > { %509 = vmatmul.bf16.gmra.mxu2 %v854_v15  ;;  %519 = vmatmul.bf16.gmra.mxu3 %v856_v16 }
  0xd7   : > { %v485_v19 = vpop.f32.mrf.mxu0  ;;  %v495_v20 = vpop.f32.mrf.mxu1 }
  0xd8   : > { %v525_v21 = vadd.f32 %v485_v19, %v332_v17  ;;  %v529_v22 = vadd.f32 %v495_v20, %v336_v18 }
  0xda   : > { %541 = vst [vmem:[#allocation2 + $0x30] sm:$0xff] %v525_v21 }
  0xdb   : > { %545 = vst [vmem:[#allocation2 + $0x50] sm:$0xff] %v529_v22 }
  0xde   : > { %v505_v27 = vpop.f32.mrf.mxu2  ;;  %v515_v28 = vpop.f32.mrf.mxu3 }
  0xdf   : > { %v533_v29 = vadd.f32 %v505_v27, %v340_v23  ;;  %v537_v30 = vadd.f32 %v515_v28, %v344_v24  ;;  %v487_v31 = vpop.f32.mrf.mxu0  ;;  %v497_v32 = vpop.f32.mrf.mxu1 }
  0xe0   : > { %v526_v33 = vadd.f32 %v487_v31, %v333_v25  ;;  %v530_v34 = vadd.f32 %v497_v32, %v337_v26 }
  0xe1   : > { %549 = vst [vmem:[#allocation2 + $0x40] sm:$0xff] %v533_v29 }
  0xe2   : > { %553 = vst [vmem:[#allocation2 + $0x60] sm:$0xff] %v537_v30 }
  0xe3   : > { %542 = vst [vmem:[#allocation2] sm:$0xff] %v526_v33 }
  0xe4   : > { %546 = vst [vmem:[#allocation2 + $0x68] sm:$0xff] %v530_v34 }
  0xe6   : > { %v507_v39 = vpop.f32.mrf.mxu2  ;;  %v517_v40 = vpop.f32.mrf.mxu3 }
  0xe7   : > { %v534_v41 = vadd.f32 %v507_v39, %v341_v35  ;;  %v538_v42 = vadd.f32 %v517_v40, %v345_v36  ;;  %v490_v43 = vpop.f32.mrf.mxu0  ;;  %v500_v44 = vpop.f32.mrf.mxu1 }
  0xe8   : > { %v527_v45 = vadd.f32 %v490_v43, %v334_v37  ;;  %v531_v46 = vadd.f32 %v500_v44, %v338_v38 }
  0xe9   : > { %550 = vst [vmem:[#allocation2 + $0x20] sm:$0xff] %v534_v41 }
  0xea   : > { %554 = vst [vmem:[#allocation2 + $0x70] sm:$0xff] %v538_v42 }
  0xeb   : > { %543 = vst [vmem:[#allocation2 + $0x58] sm:$0xff] %v527_v45 }
  0xec   : > { %547 = vst [vmem:[#allocation2 + $0x8] sm:$0xff] %v531_v46 }
  0xee   : > { %v510_v51 = vpop.f32.mrf.mxu2  ;;  %v520_v52 = vpop.f32.mrf.mxu3 }
  0xef   : > { %v535_v53 = vadd.f32 %v510_v51, %v342_v47  ;;  %v539_v54 = vadd.f32 %v520_v52, %v346_v48  ;;  %v492_v55 = vpop.f32.mrf.mxu0  ;;  %v502_v56 = vpop.f32.mrf.mxu1 }
  0xf0   : > { %v528_v57 = vadd.f32 %v492_v55, %v335_v49  ;;  %v532_v58 = vadd.f32 %v502_v56, %v339_v50 }
  0xf1   : > { %551 = vst [vmem:[#allocation2 + $0x10] sm:$0xff] %v535_v53 }
  0xf2   : > { %555 = vst [vmem:[#allocation2 + $0x78] sm:$0xff] %v539_v54 }
  0xf3   : > { %544 = vst [vmem:[#allocation2 + $0x18] sm:$0xff] %v528_v57 }
  0xf4   : > { %548 = vst [vmem:[#allocation2 + $0x48] sm:$0xff] %v532_v58 }
  0xf6   : > { %v512_v61 = vpop.f32.mrf.mxu2  ;;  %v522_v62 = vpop.f32.mrf.mxu3  ;;  %560 = sbr.rel (%p843_p0) target bundleno = 272 (0x110), region = 52 }
  0xf7   : > { %v536_v63 = vadd.f32 %v512_v61, %v343_v59  ;;  %v540_v0 = vadd.f32 %v522_v62, %v347_v60 }
  0xf9   : > { %552 = vst [vmem:[#allocation2 + $0x38] sm:$0xff] %v536_v63 }
  0xfa   : > { %556 = vst [vmem:[#allocation2 + $0x28] sm:$0xff] %v540_v0 }
  0xfb   : > { %v561_v1 = vld [vmem:[#allocation2 + $0x30] sm:$0xff]  ;;  %v962_v2 = vld [vmem:[%s1285_s2] ss:$0 sm:$0xff]  ;;  %v563_v7 = vld [vmem:[#allocation2 + $0x58] sm:$0xff] }
  0xfc   : > { %v963_v3 = vld [vmem:[%s1286_s3] ss:$0 sm:$0xff]  ;;  %v581_v5 = vmul.f32 %v962_v2, %v561_v1  ;;  %v564_v8 = vld [vmem:[#allocation2 + $0x18] sm:$0xff]  ;;  %v565_v9 = vld [vmem:[#allocation2 + $0x50] sm:$0xff]  ;;  %v583_v10 = vmul.f32 %v962_v2, %v563_v7 }
  0xfd   : > { %v562_v4 = vld [vmem:[#allocation2] sm:$0xff]  ;;  %v584_v11 = vmul.f32 %v962_v2, %v564_v8  ;;  %v585_v12 = vmul.f32 %v962_v2, %v565_v9  ;;  %v566_v13 = vld [vmem:[#allocation2 + $0x68] sm:$0xff]  ;;  %v571_v25 = vld [vmem:[#allocation2 + $0x10] sm:$0xff] }
  0xfe   : > { %v582_v6 = vmul.f32 %v962_v2, %v562_v4  ;;  %v567_v14 = vld [vmem:[#allocation2 + $0x8] sm:$0xff]  ;;  %v601_v16 = vadd.f32 %v963_v3, %v581_v5  ;;  %v586_v18 = vmul.f32 %v962_v2, %v566_v13  ;;  %v569_v20 = vld [vmem:[#allocation2 + $0x40] sm:$0xff]  ;;  %v603_v22 = vadd.f32 %v963_v3, %v583_v10  ;;  %v574_v34 = vld [vmem:[#allocation2 + $0x70] sm:$0xff] }
  0xff   : > { %v568_v15 = vld [vmem:[#allocation2 + $0x48] sm:$0xff]  ;;  %v587_v19 = vmul.f32 %v962_v2, %v567_v14  ;;  %v570_v21 = vld [vmem:[#allocation2 + $0x20] sm:$0xff]  ;;  %v604_v23 = vadd.f32 %v963_v3, %v584_v11  ;;  %v605_v26 = vadd.f32 %v963_v3, %v585_v12  ;;  %v589_v27 = vmul.f32 %v962_v2, %v569_v20  ;;  %v575_v37 = vld [vmem:[#allocation2 + $0x78] sm:$0xff] }
 0x100   : > { %v602_v17 = vadd.f32 %v963_v3, %v582_v6  ;;  %v588_v24 = vmul.f32 %v962_v2, %v568_v15  ;;  %617 = vst [vmem:[#allocation8] sm:$0xff] %v601_v16  ;;  %v572_v28 = vld [vmem:[#allocation2 + $0x38] sm:$0xff]  ;;  %v606_v29 = vadd.f32 %v963_v3, %v586_v18  ;;  %v590_v30 = vmul.f32 %v962_v2, %v570_v21  ;;  %v573_v31 = vld [vmem:[#allocation2 + $0x60] sm:$0xff] }
 0x101   : > { %619 = vst [vmem:[#allocation8 + $0x10] sm:$0xff] %v603_v22  ;;  %v607_v32 = vadd.f32 %v963_v3, %v587_v19  ;;  %v591_v33 = vmul.f32 %v962_v2, %v571_v25  ;;  %v592_v36 = vmul.f32 %v962_v2, %v572_v28  ;;  %v609_v38 = vadd.f32 %v963_v3, %v589_v27  ;;  %v576_v40 = vld [vmem:[#allocation2 + $0x28] sm:$0xff] }
 0x102   : > { %618 = vst [vmem:[#allocation8 + $0x8] sm:$0xff] %v602_v17  ;;  %v608_v35 = vadd.f32 %v963_v3, %v588_v24  ;;  %v593_v39 = vmul.f32 %v962_v2, %v573_v31  ;;  %v610_v41 = vadd.f32 %v963_v3, %v590_v30  ;;  %v594_v42 = vmul.f32 %v962_v2, %v574_v34 }
 0x103   : > { %620 = vst [vmem:[#allocation8 + $0x18] sm:$0xff] %v604_v23  ;;  %v611_v43 = vadd.f32 %v963_v3, %v591_v33  ;;  %v595_v44 = vmul.f32 %v962_v2, %v575_v37  ;;  %v612_v45 = vadd.f32 %v963_v3, %v592_v36  ;;  %v596_v46 = vmul.f32 %v962_v2, %v576_v40 }
 0x104   : > { %621 = vst [vmem:[#allocation8 + $0x20] sm:$0xff] %v605_v26  ;;  %v613_v47 = vadd.f32 %v963_v3, %v593_v39  ;;  %v614_v48 = vadd.f32 %v963_v3, %v594_v42 }
 0x105   : > { %622 = vst [vmem:[#allocation8 + $0x28] sm:$0xff] %v606_v29  ;;  %v615_v49 = vadd.f32 %v963_v3, %v595_v44  ;;  %v616_v50 = vadd.f32 %v963_v3, %v596_v46 }
 0x106   : > { %623 = vst [vmem:[#allocation8 + $0x30] sm:$0xff] %v607_v32 }
 0x107   : > { %624 = vst [vmem:[#allocation8 + $0x38] sm:$0xff] %v608_v35 }
 0x108   : > { %625 = vst [vmem:[#allocation8 + $0x40] sm:$0xff] %v609_v38 }
 0x109   : > { %626 = vst [vmem:[#allocation8 + $0x48] sm:$0xff] %v610_v41 }
 0x10a   : > { %627 = vst [vmem:[#allocation8 + $0x50] sm:$0xff] %v611_v43 }
 0x10b   : > { %628 = vst [vmem:[#allocation8 + $0x58] sm:$0xff] %v612_v45 }
 0x10c   : > { %629 = vst [vmem:[#allocation8 + $0x60] sm:$0xff] %v613_v47 }
 0x10d   : > { %630 = vst [vmem:[#allocation8 + $0x68] sm:$0xff] %v614_v48 }
 0x10e   : > { %631 = vst [vmem:[#allocation8 + $0x70] sm:$0xff] %v615_v49 }
 0x10f   : > { %632 = vst [vmem:[#allocation8 + $0x78] sm:$0xff] %v616_v50 }
 0x110 PF: > { %s1292_s18 = sadd.s32 4294967295, %s1110_s20   ;;  %s644_s23 = sshll.u32 %s1287_s4, 4  ;;  %s645_s23 = int_to_ptr.hbm [resolvable:$true] %s644_s23 }
 0x111   : > { %p905_p1 = scmp.eq.s32.totalorder %s1292_s18, 8  ;;  %s1116_s25 = smov [#allocation8]  }
 0x112   : > { %s642_s29 = sshll.u32 %s1116_s25, 4  ;;  %s1117_s24 = smov 128   ;;  %s643_s29 = int_to_ptr.vmem [resolvable:$true] %s642_s29 }
 0x113   : > { %s1118_s5 = smov 8  }
 0x114   : > { %894 = dma.vmem_to_hbm [thread:$0]  (%p905_p1), %s643_s29, 2048, %s645_s23, [#allocation5], %s1117_s24, %s1117_s24, %s1118_s5  }
 0x115   : > { %1085 = dma.done.wait (%p905_p1), [#allocation5], 2048  }
 0x116   : > { %1087 = vsyncadd (%p905_p1), [#allocation5], 4294965248 }
 0x117 PF: > { %s21_s20 = sadd.s32 1, %s1110_s20   ;;  %s1293_s15 = smov %s1094_s16 }
 0x118   : > { %p18_p2 = scmp.ge.s32.totalorder %s21_s20, 11   ;;  %s1294_s16 = smov %s1098_s17 }
 0x119   : > { %s1295_s17 = smov %s1195_s27  ;;  %s1296_s18 = smov %s1106_s19 }
 0x11a   : > { %s1297_s19 = smov %s1299_s22  ;;  %20 = sbr.rel (!%p18_p2) target bundleno = 7 (0x7), region = 101 }
 0x11f   :  { %661 = vsyncpa [#allocation4], 1 }
 0x120   :  { %663 = vsyncpa [#allocation4 + $0x1], 1 }
 0x121   :  { %664 = vsyncpa [#allocation7], 1 }
 0x122   :  { %666 = vsyncpa [#allocation7 + $0x1], 1 }
 0x123   :  { %667 = vsyncpa [#allocation5], 1 }
 0x124   :  { %669 = vsyncpa [#allocation5 + $0x1], 1 }

</bundles_post_ra>
